<compile_context>
chip_gen: v6e
topology: v6e:2x2x1
jax: 0.10.0
libtpu: 0.0.40
codegen_flags: <defaults>
</compile_context>

<pallas_src>
import jax
import jax.numpy as jnp
from jax import lax
from jax.experimental import pallas as pl
from jax.experimental.pallas import tpu as pltpu

SMOOTH = 1e-6


def _round_up(x, m):
    return (x + m - 1) // m * m


def _min_sublane(dtype):
    # Native sublane tiling: 4-byte -> 8, 2-byte -> 16, 1-byte -> 32.
    return {4: 8, 2: 16, 1: 32}[jnp.dtype(dtype).itemsize]


def _vmem_budget():
    """(streamed bytes per grid step for BOTH inputs, vmem_limit_bytes)."""
    try:
        kind = jax.devices()[0].device_kind.lower()
    except Exception:
        kind = ""
    if ("v5" in kind) or ("v6" in kind):
        # 128 MiB physical VMEM: 2 x 8 MiB inputs, double buffered ~ 32 MiB.
        return 16 * 1024 * 1024, 64 * 1024 * 1024
    # v7x (64 MiB VMEM per TensorCore) or unknown: stay conservative.
    return 8 * 1024 * 1024, 40 * 1024 * 1024


def _make_dice_kernel(n_cols, spatial_tile, need_mask):
    """Grid = (row_groups, spatial_steps); spatial (axis 1) is the reduction."""

    def kernel(logits_ref, targets_ref, dice_ref, inter_ref, union_ref):
        k = pl.program_id(1)
        n_steps = pl.num_programs(1)

        @pl.when(k == 0)
        def _init():
            inter_ref[...] = jnp.zeros_like(inter_ref)
            union_ref[...] = jnp.zeros_like(union_ref)

        def accumulate(mask_tail):
            x = logits_ref[...].astype(jnp.float32)
            t = targets_ref[...].astype(jnp.float32)
            # sigmoid(x) == 0.5*(tanh(x/2)+1): one EUP push instead of exp+div.
            p = 0.5 * (jnp.tanh(0.5 * x) + 1.0)
            if mask_tail:
                col = k * spatial_tile + lax.broadcasted_iota(jnp.int32, x.shape, 1)
                valid = col < n_cols
                # Mask p AND t (not just the products) so both the
                # intersection and union sums ignore out-of-range lanes.
                p = jnp.where(valid, p, 0.0)
                t = jnp.where(valid, t, 0.0)
            inter_ref[...] += jnp.sum(p * t, axis=1, keepdims=True)
            union_ref[...] += jnp.sum(p + t, axis=1, keepdims=True)

        if need_mask:
            # Only the last spatial step is ragged; keep the hot path unmasked.
            is_last = k == n_steps - 1
            pl.when(jnp.logical_not(is_last))(lambda: accumulate(False))
            pl.when(is_last)(lambda: accumulate(True))
        else:
            accumulate(False)

        @pl.when(k == n_steps - 1)
        def _finalize():
            dice_ref[...] = (2.0 * inter_ref[...] + SMOOTH) / (union_ref[...] + SMOOTH)

    return kernel


@jax.jit
def dice_loss(logits, targets):
    """logits, targets: [B, C, H, W] (f32/bf16 logits, f32/bf16/int8/bool targets)."""
    B, C, H, W = logits.shape
    BC = B * C
    N = H * W

    logits2d = logits.reshape(BC, N)
    targets2d = targets.reshape(BC, N)

    block_budget, vmem_limit = _vmem_budget()
    pair_bytes = jnp.dtype(logits.dtype).itemsize + jnp.dtype(targets.dtype).itemsize
    elems = max(block_budget // pair_bytes, 8 * 128)

    sub = max(_min_sublane(logits.dtype), _min_sublane(targets.dtype))

    # ---- spatial tile: lane-dense, as wide as the budget allows ------------
    if N <= 128:
        spatial_tile = N  # single full-width block (equals the full dim)
    else:
        lane_budget = max(128, (elems // sub) // 128 * 128)
        spatial_tile = min((N // 128) * 128, lane_budget)

    # ---- row tile: small, never exceeding BC, >= 2 groups when possible ----
    if BC < sub:
        row_tile = BC  # full-dim block for tiny BC
    else:
        row_cap = (BC // sub) * sub
        if BC >= 2 * sub:
            # Keep the 'parallel' row axis >= 2 groups (v7x dual TensorCore).
            half = -(-BC // 2)
            row_cap = min(row_cap, max(sub, (half // sub) * sub))
        budget_rows = max(sub, (elems // spatial_tile) // sub * sub)
        row_tile = max(sub, min(row_cap, budget_rows, 256))

    n_row_groups = pl.cdiv(BC, row_tile)
    n_steps = pl.cdiv(N, spatial_tile)
    need_mask = (N % spatial_tile) != 0

    kernel = _make_dice_kernel(N, spatial_tile, need_mask)

    dice_rows = pl.pallas_call(
        kernel,
        out_shape=jax.ShapeDtypeStruct((BC, 1), jnp.float32),
        grid=(n_row_groups, n_steps),
        in_specs=[
            pl.BlockSpec((row_tile, spatial_tile), lambda i, k: (i, k)),
            pl.BlockSpec((row_tile, spatial_tile), lambda i, k: (i, k)),
        ],
        out_specs=pl.BlockSpec((row_tile, 1), lambda i, k: (i, 0)),
        scratch_shapes=[
            pltpu.VMEM((row_tile, 1), jnp.float32),  # intersection accumulator
            pltpu.VMEM((row_tile, 1), jnp.float32),  # union accumulator
        ],
        compiler_params=pltpu.CompilerParams(
            dimension_semantics=("parallel", "arbitrary"),
            vmem_limit_bytes=vmem_limit,
        ),
    )(logits2d, targets2d)

    return 1.0 - jnp.mean(dice_rows[:, 0])


def dice_loss_ref(logits, targets, smooth=SMOOTH):
    probs = jax.nn.sigmoid(logits.astype(jnp.float32))
    B, C = logits.shape[:2]
    p = probs.reshape(B, C, -1)
    t = targets.astype(jnp.float32).reshape(B, C, -1)
    intersection = jnp.sum(p * t, axis=2)
    union = jnp.sum(p, axis=2) + jnp.sum(t, axis=2)
    dice = (2.0 * intersection + smooth) / (union + smooth)
    return 1.0 - jnp.mean(dice)


def _check(shape, key):
    k1, k2 = jax.random.split(key)
    logits = jax.random.normal(k1, shape, dtype=jnp.float32)
    targets = (jax.random.uniform(k2, shape) > 0.5).astype(jnp.float32)
    loss = dice_loss(logits, targets)
    jax.block_until_ready(loss)
    ref = dice_loss_ref(logits, targets)
    assert jnp.allclose(loss, ref, atol=1e-5, rtol=1e-5), (shape, loss, ref)


if __name__ == "__main__":
    key = jax.random.PRNGKey(0)
    keys = jax.random.split(key, 3)

    # Primary case (aligned everywhere).
    _check((2, 4, 16, 16), keys[0])
    # Ragged spatial dim -> exercises the in-kernel tail-lane mask.
    _check((2, 4, 17, 17), keys[1])
    # Ragged row dim -> exercises the cdiv row grid (dropped OOB row writes).
    _check((3, 4, 16, 16), keys[2])

    print("KERNEL_OK")
</pallas_src>

<mosaic_0001>
module attributes {stable_mosaic.version = 11 : i64} {
  func.func @kernel(%arg0: i32, %arg1: i32, %arg2: memref<8x256xf32, #tpu.memory_space<vmem>>, %arg3: memref<8x256xf32, #tpu.memory_space<vmem>>, %arg4: memref<8x1xf32, #tpu.memory_space<vmem>>, %arg5: memref<8x1xf32, #tpu.memory_space<vmem>>, %arg6: memref<8x1xf32, #tpu.memory_space<vmem>>) attributes {dimension_semantics = [#tpu.dimension_semantics<parallel>, #tpu.dimension_semantics<arbitrary>], iteration_bounds = array<i64: 1, 1>, scalar_prefetch = 0 : i64, scratch_operands = 2 : i64, tpu.core_type = #tpu.core_type<tc>, window_params = [{transform_indices = @transform_0, window_bounds = array<i64: 8, 256>}, {transform_indices = @transform_1, window_bounds = array<i64: 8, 256>}, {transform_indices = @transform_2, window_bounds = array<i64: 8, 1>}]} {
    %c0_i32 = arith.constant 0 : i32
    %0 = arith.cmpi eq, %arg1, %c0_i32 : i32
    %1 = arith.extui %0 : i1 to i32
    %c0_i32_0 = arith.constant 0 : i32
    %2 = arith.cmpi ne, %1, %c0_i32_0 : i32
    scf.if %2 {
      %cst_18 = arith.constant 0.000000e+00 : f32
      %27 = vector.broadcast %cst_18 : f32 to vector<8x1xf32>
      %c0_19 = arith.constant 0 : index
      %c0_20 = arith.constant 0 : index
      %28 = vector.load %arg5[%c0_19, %c0_20] : memref<8x1xf32, #tpu.memory_space<vmem>>, vector<8x1xf32>
      tpu.vector_store %arg5[%c0_19, %c0_20], %27 {strides = array<i32>} : memref<8x1xf32, #tpu.memory_space<vmem>>, vector<8x1xf32>,
      %cst_21 = arith.constant 0.000000e+00 : f32
      %29 = vector.broadcast %cst_21 : f32 to vector<8x1xf32>
      %c0_22 = arith.constant 0 : index
      %c0_23 = arith.constant 0 : index
      %30 = vector.load %arg6[%c0_22, %c0_23] : memref<8x1xf32, #tpu.memory_space<vmem>>, vector<8x1xf32>
      tpu.vector_store %arg6[%c0_22, %c0_23], %29 {strides = array<i32>} : memref<8x1xf32, #tpu.memory_space<vmem>>, vector<8x1xf32>,
    } else {
    }
    %c0 = arith.constant 0 : index
    %c0_1 = arith.constant 0 : index
    %3 = vector.load %arg2[%c0, %c0_1] : memref<8x256xf32, #tpu.memory_space<vmem>>, vector<8x256xf32>
    %c0_2 = arith.constant 0 : index
    %c0_3 = arith.constant 0 : index
    %4 = vector.load %arg3[%c0_2, %c0_3] : memref<8x256xf32, #tpu.memory_space<vmem>>, vector<8x256xf32>
    %cst = arith.constant 5.000000e-01 : f32
    %5 = vector.broadcast %cst : f32 to vector<8x256xf32>
    %6 = arith.mulf %5, %3 : vector<8x256xf32>
    %7 = math.tanh %6 : vector<8x256xf32>
    %cst_4 = arith.constant 1.000000e+00 : f32
    %8 = vector.broadcast %cst_4 : f32 to vector<8x256xf32>
    %9 = arith.addf %7, %8 : vector<8x256xf32>
    %cst_5 = arith.constant 5.000000e-01 : f32
    %10 = vector.broadcast %cst_5 : f32 to vector<8x256xf32>
    %11 = arith.mulf %10, %9 : vector<8x256xf32>
    %c0_6 = arith.constant 0 : index
    %c0_7 = arith.constant 0 : index
    %12 = vector.load %arg5[%c0_6, %c0_7] : memref<8x1xf32, #tpu.memory_space<vmem>>, vector<8x1xf32>
    %13 = arith.mulf %11, %4 : vector<8x256xf32>
    %cst_8 = arith.constant dense<0.000000e+00> : vector<8xf32>
    %14 = vector.multi_reduction <add>, %13, %cst_8 [1] : vector<8x256xf32> to vector<8xf32>
    %15 = vector.shape_cast %14 : vector<8xf32> to vector<8x1xf32>
    %16 = arith.addf %12, %15 : vector<8x1xf32>
    %c0_9 = arith.constant 0 : index
    %c0_10 = arith.constant 0 : index
    %17 = vector.load %arg5[%c0_9, %c0_10] : memref<8x1xf32, #tpu.memory_space<vmem>>, vector<8x1xf32>
    tpu.vector_store %arg5[%c0_9, %c0_10], %16 {strides = array<i32>} : memref<8x1xf32, #tpu.memory_space<vmem>>, vector<8x1xf32>,
    %c0_11 = arith.constant 0 : index
    %c0_12 = arith.constant 0 : index
    %18 = vector.load %arg6[%c0_11, %c0_12] : memref<8x1xf32, #tpu.memory_space<vmem>>, vector<8x1xf32>
    %19 = arith.addf %11, %4 : vector<8x256xf32>
    %cst_13 = arith.constant dense<0.000000e+00> : vector<8xf32>
    %20 = vector.multi_reduction <add>, %19, %cst_13 [1] : vector<8x256xf32> to vector<8xf32>
    %21 = vector.shape_cast %20 : vector<8xf32> to vector<8x1xf32>
    %22 = arith.addf %18, %21 : vector<8x1xf32>
    %c0_14 = arith.constant 0 : index
    %c0_15 = arith.constant 0 : index
    %23 = vector.load %arg6[%c0_14, %c0_15] : memref<8x1xf32, #tpu.memory_space<vmem>>, vector<8x1xf32>
    tpu.vector_store %arg6[%c0_14, %c0_15], %22 {strides = array<i32>} : memref<8x1xf32, #tpu.memory_space<vmem>>, vector<8x1xf32>,
    %c0_i32_16 = arith.constant 0 : i32
    %24 = arith.cmpi eq, %arg1, %c0_i32_16 : i32
    %25 = arith.extui %24 : i1 to i32
    %c0_i32_17 = arith.constant 0 : i32
    %26 = arith.cmpi ne, %25, %c0_i32_17 : i32
    scf.if %26 {
      %c0_18 = arith.constant 0 : index
      %c0_19 = arith.constant 0 : index
      %27 = vector.load %arg5[%c0_18, %c0_19] : memref<8x1xf32, #tpu.memory_space<vmem>>, vector<8x1xf32>
      %cst_20 = arith.constant 2.000000e+00 : f32
      %28 = vector.broadcast %cst_20 : f32 to vector<8x1xf32>
      %29 = arith.mulf %28, %27 : vector<8x1xf32>
      %cst_21 = arith.constant 9.99999997E-7 : f32
      %30 = vector.broadcast %cst_21 : f32 to vector<8x1xf32>
      %31 = arith.addf %29, %30 : vector<8x1xf32>
      %c0_22 = arith.constant 0 : index
      %c0_23 = arith.constant 0 : index
      %32 = vector.load %arg6[%c0_22, %c0_23] : memref<8x1xf32, #tpu.memory_space<vmem>>, vector<8x1xf32>
      %cst_24 = arith.constant 9.99999997E-7 : f32
      %33 = vector.broadcast %cst_24 : f32 to vector<8x1xf32>
      %34 = arith.addf %32, %33 : vector<8x1xf32>
      %35 = arith.divf %31, %34 : vector<8x1xf32>
      %c0_25 = arith.constant 0 : index
      %c0_26 = arith.constant 0 : index
      %36 = vector.load %arg4[%c0_25, %c0_26] : memref<8x1xf32, #tpu.memory_space<vmem>>, vector<8x1xf32>
      tpu.vector_store %arg4[%c0_25, %c0_26], %35 {strides = array<i32>} : memref<8x1xf32, #tpu.memory_space<vmem>>, vector<8x1xf32>,
    } else {
    }
    return
  }
  func.func @transform_0(%arg0: i32, %arg1: i32) -> (i32, i32) {
    %c0_i32 = arith.constant 0 : i32
    return %arg0, %arg1 : i32, i32
  }
  func.func @transform_1(%arg0: i32, %arg1: i32) -> (i32, i32) {
    %c0_i32 = arith.constant 0 : i32
    return %arg0, %arg1 : i32, i32
  }
  func.func @transform_2(%arg0: i32, %arg1: i32) -> (i32, i32) {
    %c0_i32 = arith.constant 0 : i32
    %c0_i32_0 = arith.constant 0 : i32
    return %arg0, %c0_i32 : i32, i32
  }
}

</mosaic_0001>

<bundles_post_ra>
// kernel: dice_loss.1
= control target key start
LH: loop header
LB: loop body
LE: loop exit
PB: predicated region body
PF: predicated region fallthrough
CT: control target
= control target key end

     0   :  { %vm15_vm0 = vcmask 7168   ;;  %v69_v2 = vmov 0.0   ;;  %s105_s0 = inlined_call_operand.vmem [shape: f32[8,256], index: 0, kind: input, shape index: {}]   ;;  %s106_s1 = inlined_call_operand.vmem [shape: f32[8,256], index: 1, kind: input, shape index: {}]   ;;  %s107_s2 = inlined_call_operand.vmem [shape: f32[8,1], index: 2, kind: output, shape index: {}]  }
   0x1   :  { %v18_v0 = vld [vmem:[%s105_s0] sm:$0xff]  ;;  %v19_v1 = vld [vmem:[%s105_s0 + $0x8] sm:$0xff]  ;;  %17 = vst.msk [vmem:[#allocation3] sm:$0xff] %vm15_vm0, %v69_v2  ;;  %16 = vst.msk [vmem:[#allocation2] sm:$0xff] %vm15_vm0, %v69_v2 }
   0x2   :  { %v22_v3 = vmul.f32 0.5, %v18_v0  ;;  %v23_v4 = vmul.f32 0.5, %v19_v1  ;;  %v20_v8 = vld [vmem:[%s106_s1] sm:$0xff]  ;;  %v21_v10 = vld [vmem:[%s106_s1 + $0x8] sm:$0xff] }
   0x4   :  { %63 = vtanh.f32 %v22_v3 }
   0x5   :  { %65 = vtanh.f32 %v23_v4 }
   0x8   :  { %v39_v19 = vld [vmem:[#allocation3] sm:$0xff]  ;;  %v30_v22 = vld [vmem:[#allocation2] sm:$0xff] }
  0x11   :  { %v64_v5 = vpop.eup %63 }
  0x12   :  { %v66_v6 = vpop.eup %65  ;;  %v26_v7 = vadd.f32 1.0, %v64_v5 }
  0x13   :  { %v27_v9 = vadd.f32 1.0, %v66_v6 }
  0x14   :  { %v28_v11 = vmul.f32 0.5, %v26_v7 }
  0x15   :  { %v29_v12 = vmul.f32 0.5, %v27_v9 }
  0x16   :  { %v40_v13 = vadd.f32 %v28_v11, %v20_v8  ;;  %v31_v15 = vmul.f32 %v28_v11, %v20_v8 }
  0x17   :  { %v41_v14 = vadd.f32 %v29_v12, %v21_v10  ;;  %v32_v16 = vmul.f32 %v29_v12, %v21_v10 }
  0x19   :  { %v42_v17 = vadd.f32 %v41_v14, %v40_v13  ;;  %v33_v18 = vadd.f32 %v32_v16, %v31_v15 }
  0x1b   :  { %43 = vadd.xlane.f32.xlu0 %v42_v17 }
  0x1f   :  { %34 = vadd.xlane.f32.xlu0 %v33_v18 }
  0xa4   :  { %v44_v20 = vpop.xlane.xlu0 %43 }
  0xa5   :  { %v45_v21 = vadd.f32 %v44_v20, %v39_v19 }
  0xa7   :  { %46 = vst.msk [vmem:[#allocation3] sm:$0xff] %vm15_vm0, %v45_v21 }
  0xa8   :  { %v35_v23 = vpop.xlane.xlu0 %34 }
  0xa9   :  { %v36_v24 = vadd.f32 %v35_v23, %v30_v22 }
  0xab   :  { %38 = vst.msk [vmem:[#allocation2] sm:$0xff] %vm15_vm0, %v36_v24 }
  0xae   :  { %v53_v25 = vld [vmem:[#allocation3] sm:$0xff] }
  0xaf   :  { %v54_v26 = vadd.f32 1e-06, %v53_v25 }
  0xb1   :  { %67 = vrcp.f32 %v54_v26 }
  0xb2   :  { %v50_v27 = vld [vmem:[#allocation2] sm:$0xff] }
  0xb3   :  { %v51_v28 = vmul.f32 2.0, %v50_v27 }
  0xb5   :  { %v52_v29 = vadd.f32 1e-06, %v51_v28 }
  0xbe   :  { %v68_v30 = vpop.eup %67 }
  0xbf   :  { %v56_v31 = vmul.f32 %v68_v30, %v52_v29 }
  0xc1   :  { %57 = vst.msk [vmem:[%s107_s2] sm:$0xff] %vm15_vm0, %v56_v31 }

</bundles_post_ra>
